<compile_context>
chip_gen: v5e
topology: v5e:2x2
jax: 0.10.0
libtpu: 0.0.40
codegen_flags: <defaults>
</compile_context>

<pallas_src>
import jax
import jax.numpy as jnp
from jax.experimental import pallas as pl
from jax.experimental.pallas import tpu as pltpu


def _ising_kernel(st_ref, j_ref, o_ref):
    # st_ref: (D, TB)  states^T tile -- spin dim on sublanes, batch on lanes.
    # j_ref : (D, D)   interaction matrix J (f32), resident across the grid.
    # o_ref : (1, TB)  energies for this batch tile (lane-dense row).
    st = st_ref[...].astype(jnp.float32)                                  # (D, TB)
    # tmp^T = (s @ J^T)^T = J @ s^T   -- single MXU matmul, f32 accumulate.
    tmp_t = jnp.dot(j_ref[...], st, preferred_element_type=jnp.float32)   # (D, TB)
    # E_b = -sum_d s_bd * tmp_bd : sublane reduction gives a lane-dense row.
    o_ref[...] = -jnp.sum(st * tmp_t, axis=0, keepdims=True)              # (1, TB)


def _choose_batch_tile(B, tb):
    """Pick the per-grid-step batch-tile width (lane axis)."""
    tb = max(128, (int(tb) // 128) * 128)        # sanitize to a lane multiple
    if B <= tb:
        # Whole batch fits in one full-extent block (no alignment constraint).
        # If it is large enough, split into two aligned tiles so a 2-TensorCore
        # chip (v7x) can shard the "parallel" grid axis across both cores.
        if B >= 512 and B % 256 == 0:
            return B // 2
        return B
    return tb


def ising_energy(states, J, *, tb=512):
    """Ising energies: E = -(s * (s @ J.T)).sum(-1), shape (*batch_shape,)."""
    states = jnp.asarray(states)
    J = jnp.asarray(J)
    D = J.shape[0]
    assert J.shape == (D, D)
    assert states.shape[-1] == D
    batch_shape = states.shape[:-1]

    s2d = states.reshape(-1, D)
    B = s2d.shape[0]

    # Integer / boolean spins cast losslessly to bf16 (halves HBM read traffic
    # of the dominant input).  Float inputs stay f32 to match torch's
    # `states.float()` semantics exactly.
    if jnp.issubdtype(s2d.dtype, jnp.integer) or s2d.dtype == jnp.bool_:
        s_dt = jnp.bfloat16
    else:
        s_dt = jnp.float32

    # Lane-major layout: batch on lanes, spin dim on sublanes.  The transpose
    # fuses with the dtype cast into one XLA copy (no zero-pad concatenate).
    st_all = s2d.astype(s_dt).T                      # (D, B)
    j32 = J.astype(jnp.float32)                      # keep J in f32 for accuracy

    tb_eff = _choose_batch_tile(B, tb)
    grid = pl.cdiv(B, tb_eff)                        # partial last tile allowed:
    out_cols = grid * tb_eff                         # garbage tail sliced off below

    s_bytes = jnp.dtype(s_dt).itemsize
    # Double-buffered states tile + (double-buffered) resident J + output row.
    vmem_need = 2 * D * tb_eff * s_bytes + 2 * D * D * 4 + 2 * tb_eff * 4
    vmem_limit = int(min(64 * 2**20, max(16 * 2**20, 4 * vmem_need)))
    # TODO(synk): for very large D (J alone ~> 16 MiB f32) tile J over its rows
    # with an inner accumulation grid axis instead of keeping it VMEM-resident.

    cost = pl.CostEstimate(
        flops=2 * B * D * D + 2 * B * D,
        transcendentals=0,
        bytes_accessed=B * D * s_bytes + D * D * 4 + out_cols * 4,
    )

    out = pl.pallas_call(
        _ising_kernel,
        out_shape=jax.ShapeDtypeStruct((1, out_cols), jnp.float32),
        grid_spec=pltpu.PrefetchScalarGridSpec(
            num_scalar_prefetch=0,
            grid=(grid,),
            in_specs=[
                pl.BlockSpec((D, tb_eff), lambda i: (0, i)),   # states^T tile
                pl.BlockSpec((D, D), lambda i: (0, 0)),        # J, VMEM-resident
            ],
            out_specs=pl.BlockSpec((1, tb_eff), lambda i: (0, i)),  # lane-dense row
        ),
        compiler_params=pltpu.CompilerParams(
            dimension_semantics=("parallel",),
            vmem_limit_bytes=vmem_limit,
        ),
        cost_estimate=cost,
    )(st_all, j32)

    return out[0, :B].reshape(batch_shape)


def ising_energy_ref(states, J):
    s = jnp.asarray(states).astype(jnp.float32)
    tmp = s @ jnp.asarray(J).astype(jnp.float32).T
    return -(s * tmp).sum(-1)


if __name__ == "__main__":
    key = jax.random.PRNGKey(0)
    k_j, k_s1, k_s2 = jax.random.split(key, 3)

    D = 16                    # e.g. a 4x4 Ising lattice, flattened
    batch_shape = (2, 7)      # small arbitrary batch shape (14 states)

    # Symmetric, zero-diagonal coupling matrix.
    J = jax.random.normal(k_j, (D, D), dtype=jnp.float32)
    J = 0.5 * (J + J.T)
    J = J * (1.0 - jnp.eye(D, dtype=jnp.float32))

    # Spin configurations in {-1, +1}, stored as int32 (forward casts to float).
    spins = jax.random.bernoulli(k_s1, 0.5, batch_shape + (D,)).astype(jnp.int32) * 2 - 1

    out = jax.block_until_ready(ising_energy(spins, J))
    ref = ising_energy_ref(spins, J)
    assert out.shape == batch_shape, (out.shape, batch_shape)
    assert jnp.allclose(out, ref, atol=1e-3, rtol=1e-3), (out, ref)

    # Second check: batch large enough to exercise the multi-tile grid and the
    # padding-free partial last tile (B=700 > tb=512, 700 % 512 != 0).
    spins2 = jax.random.bernoulli(k_s2, 0.5, (700, D)).astype(jnp.int32) * 2 - 1
    out2 = jax.block_until_ready(ising_energy(spins2, J))
    ref2 = ising_energy_ref(spins2, J)
    assert out2.shape == (700,), out2.shape
    assert jnp.allclose(out2, ref2, atol=1e-3, rtol=1e-3)

    print("KERNEL_OK")
</pallas_src>

<mosaic_0001>
module attributes {stable_mosaic.version = 11 : i64} {
  func.func @_ising_kernel(%arg0: i32, %arg1: memref<16x14xbf16, #tpu.memory_space<vmem>>, %arg2: memref<16x16xf32, #tpu.memory_space<vmem>>, %arg3: memref<1x14xf32, #tpu.memory_space<vmem>>) attributes {dimension_semantics = [#tpu.dimension_semantics<parallel>], iteration_bounds = array<i64: 1>, scalar_prefetch = 0 : i64, scratch_operands = 0 : i64, tpu.core_type = #tpu.core_type<tc>, window_params = [{transform_indices = @transform_0, window_bounds = array<i64: 16, 14>}, {pipeline_mode = #tpu.pipeline_mode<synchronous>, transform_indices = @transform_1, window_bounds = array<i64: 16, 16>}, {transform_indices = @transform_2, window_bounds = array<i64: 1, 14>}]} {
    %c0 = arith.constant 0 : index
    %c0_0 = arith.constant 0 : index
    %0 = vector.load %arg1[%c0, %c0_0] : memref<16x14xbf16, #tpu.memory_space<vmem>>, vector<16x14xbf16>
    %1 = arith.extf %0 : vector<16x14xbf16> to vector<16x14xf32>
    %c0_1 = arith.constant 0 : index
    %c0_2 = arith.constant 0 : index
    %2 = vector.load %arg2[%c0_1, %c0_2] : memref<16x16xf32, #tpu.memory_space<vmem>>, vector<16x16xf32>
    %cst = arith.constant dense<0.000000e+00> : vector<16x14xf32>
    %3 = tpu.matmul %2, %1, %cst {dimension_numbers = #tpu.dot_dimension_numbers<[1], [0], [0], [1], [0, 0, 1, 1], [], []>} : vector<16x16xf32>, vector<16x14xf32>, vector<16x14xf32> -> vector<16x14xf32>
    %4 = arith.mulf %1, %3 : vector<16x14xf32>
    %cst_3 = arith.constant dense<0.000000e+00> : vector<14xf32>
    %5 = vector.multi_reduction <add>, %4, %cst_3 [0] : vector<16x14xf32> to vector<14xf32>
    %6 = vector.shape_cast %5 : vector<14xf32> to vector<1x14xf32>
    %cst_4 = arith.constant 0.000000e+00 : f32
    %7 = vector.broadcast %cst_4 : f32 to vector<1x14xf32>
    %8 = arith.subf %7, %6 : vector<1x14xf32>
    %c0_5 = arith.constant 0 : index
    %c0_6 = arith.constant 0 : index
    %9 = vector.load %arg3[%c0_5, %c0_6] : memref<1x14xf32, #tpu.memory_space<vmem>>, vector<1x14xf32>
    tpu.vector_store %arg3[%c0_5, %c0_6], %8 {strides = array<i32>} : memref<1x14xf32, #tpu.memory_space<vmem>>, vector<1x14xf32>,
    return
  }
  func.func @transform_0(%arg0: i32) -> (i32, i32) {
    %c0_i32 = arith.constant 0 : i32
    %c0_i32_0 = arith.constant 0 : i32
    return %c0_i32, %arg0 : i32, i32
  }
  func.func @transform_1(%arg0: i32) -> (i32, i32) {
    %c0_i32 = arith.constant 0 : i32
    %c0_i32_0 = arith.constant 0 : i32
    %c0_i32_1 = arith.constant 0 : i32
    return %c0_i32, %c0_i32_0 : i32, i32
  }
  func.func @transform_2(%arg0: i32) -> (i32, i32) {
    %c0_i32 = arith.constant 0 : i32
    %c0_i32_0 = arith.constant 0 : i32
    return %c0_i32, %arg0 : i32, i32
  }
}

</mosaic_0001>

<bundles_post_ra>
// kernel: tpu_custom_call.1
= control target key start
LH: loop header
LB: loop body
LE: loop exit
PB: predicated region body
PF: predicated region fallthrough
CT: control target
= control target key end

     0   :  { %7 = vsyncpa [#allocation3], 0  ;;  %s237_s0 = inlined_call_operand.hbm [shape: bf16[16,14], index: 0, kind: input, shape index: {}]   ;;  %s238_s1 = inlined_call_operand.hbm [shape: f32[16,16], index: 1, kind: input, shape index: {}]   ;;  %s239_s2 = inlined_call_operand.hbm [shape: f32[1,14], index: 2, kind: output, shape index: {}]  }
   0x1   :  { %8 = vsyncpa [#allocation6], 0 }
   0x2   :  { %9 = vsyncpa [#allocation4], 0  ;;  %s14_s11 = sshll.u32 %s237_s0, 4  ;;  %s206_s12 = smov [#allocation2]   ;;  %s15_s11 = int_to_ptr.hbm [resolvable:$true] %s14_s11 }
   0x3   :  { %s16_s13 = sshll.u32 %s206_s12, 4  ;;  %s27_s16 = sshll.u32 %s238_s1, 4  ;;  %s17_s13 = int_to_ptr.vmem [resolvable:$true] %s16_s13  ;;  %s28_s16 = int_to_ptr.hbm [resolvable:$true] %s27_s16 }
   0x4   :  { %s207_s17 = smov 64   ;;  %s208_s18 = smov 4  }
   0x5   :  { %22 = dma.hbm_to_vmem [thread:$0]  %s15_s11, 128, %s17_s13, [#allocation3], %s207_s17, %s207_s17, %s208_s18  }
   0x6   :  { %s209_s19 = smov [#allocation5]   ;;  %s210_s21 = smov 128  }
   0x7   :  { %s29_s20 = sshll.u32 %s209_s19, 4  ;;  %s211_s22 = smov 8   ;;  %s30_s20 = int_to_ptr.vmem [resolvable:$true] %s29_s20 }
   0x8   :  { %35 = dma.hbm_to_vmem [thread:$0]  %s28_s16, 256, %s30_s20, [#allocation6], %s210_s21, %s210_s21, %s211_s22  }
   0x9   :  { %200 = dma.done.wait [#allocation3], 128  }
   0xa   :  { %201 = vsyncadd [#allocation3], 4294967168 }
   0xb   :  { %202 = dma.done.wait [#allocation6], 256  }
   0xc   :  { %203 = vsyncadd [#allocation6], 4294967040  ;;  %v116_v0 = vld [vmem:[#allocation2] sm:$0xff]   ;;  %v48_v3 = vld [vmem:[#allocation5] sm:$0xff]  ;;  %vm50_vm0 = vcmask 130048   ;;  %vm82_vm1 = vcmask 113664  }
   0xd   :  { %v118_v1 = vunpack.c.h.bf16 %v116_v0  ;;  %v117_v2 = vunpack.c.l.bf16 %v116_v0  ;;  %v49_v4 = vld [vmem:[#allocation5 + $0x8] sm:$0xff]  ;;  %s212_s0 = smov [#allocation7]   ;;  %s102_s25 = sshll.u32 %s239_s2, 4  ;;  %vm93_vm2 = vcmask 106496   ;;  %s103_s25 = int_to_ptr.hbm [resolvable:$true] %s102_s25 }
   0xe   :  { %s100_s1 = sshll.u32 %s212_s0, 4  ;;  %s101_s1 = int_to_ptr.vmem [resolvable:$true] %s100_s1 }
   0xf   :  { %71 = vmatpush.msra.mxu0 %v118_v1  ;;  %119 = vmatpush.msra.mxu1 %v118_v1 }
  0x11   :  { %72 = vmatpush.msra.mxu0 %v117_v2  ;;  %120 = vmatpush.msra.mxu1 %v117_v2 }
  0x12   :  { %113 = vmatmul.msk.f32.vlgmr.msra.gmra.mxu0 %vm50_vm0, %v48_v3  ;;  %114 = vmatmul.msk.f32.vlgmr.msra.gmra.mxu1 %vm50_vm0, %v49_v4 }
  0x8f   :  { %v74_v5 = vpop.f32.mrf.mxu0  ;;  %v77_v6 = vpop.f32.mrf.mxu1 }
  0x90   :  { %v80_v7 = vmul.f32 %v117_v2, %v74_v5  ;;  %v81_v8 = vmul.f32 %v118_v1, %v77_v6 }
  0x92   :  { %v83_v9 = vsel %vm82_vm1, %v80_v7, 0.0  ;;  %v84_v10 = vsel %vm82_vm1, %v81_v8, 0.0 }
  0x93   :  { %v85_v11 = vadd.f32 %v84_v10, %v83_v9 }
  0x95   :  { %v86_v12 = vrot.slane %v85_v11, 4 }
  0x97   :  { %v87_v13 = vadd.f32 %v86_v12, %v85_v11 }
  0x99   :  { %v88_v14 = vrot.slane %v87_v13, 2 }
  0x9b   :  { %v89_v15 = vadd.f32 %v88_v14, %v87_v13 }
  0x9d   :  { %v90_v16 = vrot.slane %v89_v15, 1 }
  0x9f   :  { %v91_v17 = vadd.f32 %v90_v16, %v89_v15 }
  0xa1   :  { %v92_v18 = vsub.f32 0.0, %v91_v17 }
  0xa3   :  { %94 = vst.msk [vmem:[#allocation7] sm:$0x1] %vm93_vm2, %v92_v18 }
  0xa4   :  { %105 = dma.vmem_to_hbm [thread:$0]  %s101_s1, 16, %s103_s25, [#allocation4]  }
  0xa5   :  { %204 = dma.done.wait [#allocation4], 16  }
  0xa6   :  { %205 = vsyncadd [#allocation4], 4294967280 }
  0xa7   :  { %110 = vsyncpa [#allocation3], 1 }
  0xa8   :  { %111 = vsyncpa [#allocation6], 1 }
  0xa9   :  { %112 = vsyncpa [#allocation4], 1 }

</bundles_post_ra>
